<compile_context>
chip_gen: v6e
topology: v6e:2x2x1
jax: 0.10.0
libtpu: 0.0.40
codegen_flags: <defaults>
</compile_context>

<pallas_src>
import jax
import jax.numpy as jnp
from jax import lax
from jax.experimental import pallas as pl
from jax.experimental.pallas import tpu as pltpu

D = 32  # embedding_dim (hard-coded to 32 inside PostCountPredictor.__init__)


def _round_up(x, m):
    return ((x + m - 1) // m) * m


# ---------------------------------------------------------------------------
# Kernel A: per-hyperedge scalar scores.
#   x_1 tile   = inc[:, e_tile]^T @ x_0            (contraction over nodes, no transpose)
#   t_edge     = x_1 @ g      (g = W_gcn @ u; == (x_1 @ W_gcn) @ u, i.e. x_0_new's
#                              node-side contribution before the incidence aggregation)
#   s_edge     = x_1 @ v
# Grid is over E-tiles (parallel); x_0 / g / v are tiny and fully resident.
# ---------------------------------------------------------------------------
def _edge_scores_kernel(inc_ref, x0_ref, g_ref, v_ref, t_ref, s_ref):
    x1 = lax.dot_general(inc_ref[...], x0_ref[...],
                         dimension_numbers=(((0,), (0,)), ((), ())),
                         preferred_element_type=jnp.float32)          # [TE, D]
    t_ref[...] = jnp.dot(x1, g_ref[...], preferred_element_type=jnp.float32)  # [TE, 1]
    s_ref[...] = jnp.dot(x1, v_ref[...], preferred_element_type=jnp.float32)  # [TE, 1]


# ---------------------------------------------------------------------------
# Kernel B: masked rank-1 pairwise scores over an N-tile x full-E stripe.
#   s_node = inc_tile @ t_edge          (skinny matvec, == x_0_new_tile @ u)
#   out    = where(inc != 0, s_node + s_edge_row(+c), 0)
# The scatter-into-zeros of the torch module is a dense masked write here (nonzero
# indices are unique, so this is exactly equivalent).
# ---------------------------------------------------------------------------
def _masked_pair_kernel(inc_ref, t_ref, se_ref, out_ref):
    inc = inc_ref[...]                                                 # [TN, E_pad]
    s_node = jnp.dot(inc, t_ref[...], preferred_element_type=jnp.float32)  # [TN, 1]
    vals = s_node + se_ref[...]                                        # [TN, E_pad]
    out_ref[...] = jnp.where(inc != 0.0, vals, jnp.zeros_like(vals))


# ---------------------------------------------------------------------------
# Wrapper
# ---------------------------------------------------------------------------
def post_count_predictor(x_0, incidence_1, params, *, tn=256, te=512):
    n, d = x_0.shape
    e = incidence_1.shape[1]
    assert d == D

    # ---- affine collapse of the bias-only MLP (tiny [D,D]x[D,1] host matmuls) ----
    w1 = params["w1"]                                  # [2D, D] (in x out, torch W1.T)
    w1n, w1e = w1[:d, :], w1[d:, :]
    w3t = params["w3"].T                               # [D, 1]
    u = w1n @ params["w2"] @ w3t                       # [D, 1]
    v = w1e @ params["w2"] @ w3t                       # [D, 1]
    c = (params["b1"] @ params["w2"] + params["b2"]) @ w3t + params["b3"]  # [1, 1]
    g = params["w_gcn"] @ u                            # [D, 1] folds UniGCN linear + u

    # ---- padding for lane-dense stores / (8,128)-aligned tiles ----
    if e <= te:
        e_pad = _round_up(e, 128)
        te_eff = e_pad
    else:
        e_pad = _round_up(e, te)
        te_eff = te
    if n <= tn:
        n_pad = _round_up(n, 8)
        tn_eff = n_pad
    else:
        n_pad = _round_up(n, tn)
        tn_eff = tn

    inc = incidence_1.astype(jnp.float32)
    if (n_pad, e_pad) != (n, e):
        inc = jnp.zeros((n_pad, e_pad), jnp.float32).at[:n, :e].set(inc)
    x0 = x_0.astype(jnp.float32)
    if n_pad != n:
        x0 = jnp.zeros((n_pad, d), jnp.float32).at[:n, :].set(x0)

    # ---- kernel A: per-edge scores ----
    t_col, s_col = pl.pallas_call(
        _edge_scores_kernel,
        out_shape=(jax.ShapeDtypeStruct((e_pad, 1), jnp.float32),
                   jax.ShapeDtypeStruct((e_pad, 1), jnp.float32)),
        grid=(e_pad // te_eff,),
        in_specs=[pl.BlockSpec((n_pad, te_eff), lambda i: (0, i)),   # incidence E-stripe
                  pl.BlockSpec((n_pad, d), lambda i: (0, 0)),        # x_0 (full)
                  pl.BlockSpec((d, 1), lambda i: (0, 0)),            # g
                  pl.BlockSpec((d, 1), lambda i: (0, 0))],           # v
        out_specs=(pl.BlockSpec((te_eff, 1), lambda i: (i, 0)),
                   pl.BlockSpec((te_eff, 1), lambda i: (i, 0))),
        compiler_params=pltpu.CompilerParams(dimension_semantics=("parallel",)),
    )(inc, x0, g, v)

    # Lane-major edge-score row with the constant c folded in (tiny host reshape;
    # data order is unchanged since one dim is 1).
    se_row = s_col.reshape(1, e_pad) + c               # [1, E_pad]

    # ---- kernel B: masked pairwise output ----
    out = pl.pallas_call(
        _masked_pair_kernel,
        out_shape=jax.ShapeDtypeStruct((n_pad, e_pad), jnp.float32),
        grid=(n_pad // tn_eff,),
        in_specs=[pl.BlockSpec((tn_eff, e_pad), lambda i: (i, 0)),   # incidence N-tile
                  pl.BlockSpec((e_pad, 1), lambda i: (0, 0)),        # t_edge column
                  pl.BlockSpec((1, e_pad), lambda i: (0, 0))],       # s_edge row (+c)
        out_specs=pl.BlockSpec((tn_eff, e_pad), lambda i: (i, 0)),
        compiler_params=pltpu.CompilerParams(dimension_semantics=("parallel",)),
    )(inc, t_col, se_row)

    return out[:n, :e]


# ---------------------------------------------------------------------------
# Deterministic parameter init (shapes from the module's __init__; xavier-ish).
# ---------------------------------------------------------------------------
def init_params(key, d=D):
    ks = jax.random.split(key, 7)

    def xavier(k, shape):
        lim = jnp.sqrt(6.0 / (shape[0] + shape[1]))
        return jax.random.uniform(k, shape, jnp.float32, -lim, lim)

    return {
        "w_gcn": xavier(ks[0], (d, d)),          # UniGCN conv weight        [D, D]
        "w1":    xavier(ks[1], (2 * d, d)),      # Linear(2D, D) weight^T    [2D, D]
        "b1":    xavier(ks[2], (1, d)),          # Linear(2D, D) bias        [1, D]
        "w2":    xavier(ks[3], (d, d)),          # Linear(D, D) weight^T     [D, D]
        "b2":    xavier(ks[4], (1, d)),          # Linear(D, D) bias         [1, D]
        "w3":    xavier(ks[5], (1, d)),          # Linear(D, 1) weight       [1, D]
        "b3":    xavier(ks[6], (1, 1)),          # Linear(D, 1) bias         [1, 1]
    }


# ---------------------------------------------------------------------------
# Pure-JAX reference following the original (un-collapsed) torch structure.
# ---------------------------------------------------------------------------
def _reference(x_0, incidence_1, params):
    d = x_0.shape[1]
    x1 = incidence_1.T @ x_0
    x0n = incidence_1 @ (x1 @ params["w_gcn"])
    w1n, w1e = params["w1"][:d, :], params["w1"][d:, :]
    a = x0n @ w1n
    b = x1 @ w1e
    h1 = a[:, None, :] + b[None, :, :] + params["b1"][None, :, :]
    h2 = h1 @ params["w2"] + params["b2"]
    vals = jnp.squeeze(h2 @ params["w3"].T, -1) + params["b3"][0, 0]
    return jnp.where(incidence_1 != 0.0, vals, jnp.zeros_like(vals))


if __name__ == "__main__":
    key = jax.random.PRNGKey(0)
    k_x, k_inc, k_p = jax.random.split(key, 3)

    N, E = 16, 8                                   # nodes, hyperedges
    x_0 = jax.random.normal(k_x, (N, D), jnp.float32)
    incidence_1 = (jax.random.uniform(k_inc, (N, E)) < 0.3).astype(jnp.float32)
    params = init_params(k_p)

    out = post_count_predictor(x_0, incidence_1, params)
    out = jax.block_until_ready(out)

    assert out.shape == (N, E) and out.dtype == jnp.float32
    # zeros exactly where incidence is zero (scatter-into-zeros semantics)
    assert bool(jnp.all(jnp.where(incidence_1 == 0.0, out == 0.0, True)))
    # matches the un-collapsed reference up to fp32 re-association
    ref = _reference(x_0, incidence_1, params)
    assert bool(jnp.allclose(out, ref, rtol=5e-3, atol=5e-3))
    print("KERNEL_OK")
</pallas_src>

<mosaic_0001>
module attributes {stable_mosaic.version = 11 : i64} {
  func.func @_edge_scores_kernel(%arg0: i32, %arg1: memref<16x128xf32, #tpu.memory_space<vmem>>, %arg2: memref<16x32xf32, #tpu.memory_space<vmem>>, %arg3: memref<32x1xf32, #tpu.memory_space<vmem>>, %arg4: memref<32x1xf32, #tpu.memory_space<vmem>>, %arg5: memref<128x1xf32, #tpu.memory_space<vmem>>, %arg6: memref<128x1xf32, #tpu.memory_space<vmem>>) attributes {dimension_semantics = [#tpu.dimension_semantics<parallel>], iteration_bounds = array<i64: 1>, scalar_prefetch = 0 : i64, scratch_operands = 0 : i64, tpu.core_type = #tpu.core_type<tc>, window_params = [{transform_indices = @transform_0, window_bounds = array<i64: 16, 128>}, {pipeline_mode = #tpu.pipeline_mode<synchronous>, transform_indices = @transform_1, window_bounds = array<i64: 16, 32>}, {pipeline_mode = #tpu.pipeline_mode<synchronous>, transform_indices = @transform_2, window_bounds = array<i64: 32, 1>}, {pipeline_mode = #tpu.pipeline_mode<synchronous>, transform_indices = @transform_3, window_bounds = array<i64: 32, 1>}, {transform_indices = @transform_4, window_bounds = array<i64: 128, 1>}, {transform_indices = @transform_5, window_bounds = array<i64: 128, 1>}]} {
    %c0 = arith.constant 0 : index
    %c0_0 = arith.constant 0 : index
    %0 = vector.load %arg1[%c0, %c0_0] : memref<16x128xf32, #tpu.memory_space<vmem>>, vector<16x128xf32>
    %c0_1 = arith.constant 0 : index
    %c0_2 = arith.constant 0 : index
    %1 = vector.load %arg2[%c0_1, %c0_2] : memref<16x32xf32, #tpu.memory_space<vmem>>, vector<16x32xf32>
    %cst = arith.constant dense<0.000000e+00> : vector<128x32xf32>
    %2 = tpu.matmul %0, %1, %cst {dimension_numbers = #tpu.dot_dimension_numbers<[0], [0], [1], [1], [0, 1, 1, 1], [], []>} : vector<16x128xf32>, vector<16x32xf32>, vector<128x32xf32> -> vector<128x32xf32>
    %c0_3 = arith.constant 0 : index
    %c0_4 = arith.constant 0 : index
    %3 = vector.load %arg3[%c0_3, %c0_4] : memref<32x1xf32, #tpu.memory_space<vmem>>, vector<32x1xf32>
    %cst_5 = arith.constant dense<0.000000e+00> : vector<128x1xf32>
    %4 = tpu.matmul %2, %3, %cst_5 {dimension_numbers = #tpu.dot_dimension_numbers<[1], [0], [0], [1], [0, 0, 1, 1], [], []>} : vector<128x32xf32>, vector<32x1xf32>, vector<128x1xf32> -> vector<128x1xf32>
    %c0_6 = arith.constant 0 : index
    %c0_7 = arith.constant 0 : index
    %5 = vector.load %arg5[%c0_6, %c0_7] : memref<128x1xf32, #tpu.memory_space<vmem>>, vector<128x1xf32>
    tpu.vector_store %arg5[%c0_6, %c0_7], %4 {strides = array<i32>} : memref<128x1xf32, #tpu.memory_space<vmem>>, vector<128x1xf32>,
    %c0_8 = arith.constant 0 : index
    %c0_9 = arith.constant 0 : index
    %6 = vector.load %arg4[%c0_8, %c0_9] : memref<32x1xf32, #tpu.memory_space<vmem>>, vector<32x1xf32>
    %cst_10 = arith.constant dense<0.000000e+00> : vector<128x1xf32>
    %7 = tpu.matmul %2, %6, %cst_10 {dimension_numbers = #tpu.dot_dimension_numbers<[1], [0], [0], [1], [0, 0, 1, 1], [], []>} : vector<128x32xf32>, vector<32x1xf32>, vector<128x1xf32> -> vector<128x1xf32>
    %c0_11 = arith.constant 0 : index
    %c0_12 = arith.constant 0 : index
    %8 = vector.load %arg6[%c0_11, %c0_12] : memref<128x1xf32, #tpu.memory_space<vmem>>, vector<128x1xf32>
    tpu.vector_store %arg6[%c0_11, %c0_12], %7 {strides = array<i32>} : memref<128x1xf32, #tpu.memory_space<vmem>>, vector<128x1xf32>,
    return
  }
  func.func @transform_0(%arg0: i32) -> (i32, i32) {
    %c0_i32 = arith.constant 0 : i32
    %c0_i32_0 = arith.constant 0 : i32
    return %c0_i32, %arg0 : i32, i32
  }
  func.func @transform_1(%arg0: i32) -> (i32, i32) {
    %c0_i32 = arith.constant 0 : i32
    %c0_i32_0 = arith.constant 0 : i32
    %c0_i32_1 = arith.constant 0 : i32
    return %c0_i32, %c0_i32_0 : i32, i32
  }
  func.func @transform_2(%arg0: i32) -> (i32, i32) {
    %c0_i32 = arith.constant 0 : i32
    %c0_i32_0 = arith.constant 0 : i32
    %c0_i32_1 = arith.constant 0 : i32
    return %c0_i32, %c0_i32_0 : i32, i32
  }
  func.func @transform_3(%arg0: i32) -> (i32, i32) {
    %c0_i32 = arith.constant 0 : i32
    %c0_i32_0 = arith.constant 0 : i32
    %c0_i32_1 = arith.constant 0 : i32
    return %c0_i32, %c0_i32_0 : i32, i32
  }
  func.func @transform_4(%arg0: i32) -> (i32, i32) {
    %c0_i32 = arith.constant 0 : i32
    %c0_i32_0 = arith.constant 0 : i32
    return %arg0, %c0_i32 : i32, i32
  }
  func.func @transform_5(%arg0: i32) -> (i32, i32) {
    %c0_i32 = arith.constant 0 : i32
    %c0_i32_0 = arith.constant 0 : i32
    return %arg0, %c0_i32 : i32, i32
  }
}

</mosaic_0001>

<bundles_post_ra>
// kernel: tpu_custom_call.1
= control target key start
LH: loop header
LB: loop body
LE: loop exit
PB: predicated region body
PF: predicated region fallthrough
CT: control target
= control target key end

     0   :  { %vm55_vm0 = vcmask 130048   ;;  %vm253_vm1 = vcmask 261120   ;;  %vm447_vm2 = vcmask 7168   ;;  %s1082_s0 = inlined_call_operand.vmem [shape: f32[16,128], index: 0, kind: input, shape index: {}]   ;;  %s1083_s1 = inlined_call_operand.vmem [shape: f32[16,32], index: 1, kind: input, shape index: {}]   ;;  %s1084_s2 = inlined_call_operand.vmem [shape: f32[32,1], index: 2, kind: input, shape index: {}]   ;;  %s1085_s3 = inlined_call_operand.vmem [shape: f32[32,1], index: 3, kind: input, shape index: {}]   ;;  %s1086_s4 = inlined_call_operand.vmem [shape: f32[128,1], index: 4, kind: output, shape index: {0}]   ;;  %s1087_s5 = inlined_call_operand.vmem [shape: f32[128,1], index: 5, kind: output, shape index: {1}]  }
   0x1   :  { %v19_v0 = vld [vmem:[%s1082_s0] sm:$0xff]  ;;  %v22_v1 = vld [vmem:[%s1083_s1 + $0x8] sm:$0xff]  ;;  %v252_v4 = vld [vmem:[%s1084_s2 + $0x18] sm:$0xff] }
   0x2   :  { %23 = vxpose.xlu0.b32.start [1/2] (short) %v19_v0, 128  ;;  %743 = vmatprep.subr.mxu0 %v22_v1  ;;  %v21_v2 = vld [vmem:[%s1083_s1] sm:$0xff]  ;;  %v20_v3 = vld [vmem:[%s1082_s0 + $0x8] sm:$0xff]  ;;  %v467_v5 = vld [vmem:[%s1085_s3 + $0x18] sm:$0xff] }
   0x3   :  { %744 = vmatpush3.msra.mxu0 %v22_v1  ;;  %835 = vmatprep.subr.mxu1 %v22_v1  ;;  %v466_v8 = vld [vmem:[%s1085_s3 + $0x10] sm:$0xff]  ;;  %v250_v24 = vld [vmem:[%s1084_s2 + $0x8] sm:$0xff]  ;;  %v249_v26 = vld [vmem:[%s1084_s2] sm:$0xff] }
   0x4   :  { %745 = vmatprep.subr.mxu0 %v21_v2  ;;  %837 = vmatpush3.msra.mxu1 %v22_v1  ;;  %v251_v17 = vld [vmem:[%s1084_s2 + $0x10] sm:$0xff]  ;;  %v465_v25 = vld [vmem:[%s1085_s3 + $0x8] sm:$0xff]  ;;  %v464_v27 = vld [vmem:[%s1085_s3] sm:$0xff] }
   0x5   :  { %746 = vmatpush3.msra.mxu0 %v21_v2  ;;  %836 = vmatprep.subr.mxu1 %v21_v2 }
   0x6   :  { %24 = vxpose.xlu0.b32.end [2/2] (short) %v20_v3, 128  ;;  %838 = vmatpush3.msra.mxu1 %v21_v2 }
   0x7   :  { %771 = vmatprep.subr.mxu1 %v252_v4  ;;  %803 = vmatprep.subr.mxu0 %v467_v5 }
  0x7e   :  { %v39_v6 = vpop.trf.xlu0 }
  0x7f   :  { %747 = vmatprep.mubr.msk.f32.mxu0 %vm55_vm0, %v39_v6 }
  0x82   :  { %v40_v7 = vpop.trf.xlu0 }
  0x83   :  { %748 = vmatmul.mubr.msk.f32.vlgmr.msra.gmra.mxu0 %vm55_vm0, %v40_v7 }
  0x84   :  { %804 = vmatpush3.msra.mxu0 %v467_v5 }
  0x85   :  { %805 = vmatprep.subr.mxu0 %v466_v8 }
  0x86   :  { %v41_v9 = vpop.trf.xlu0  ;;  %806 = vmatpush3.msra.mxu0 %v466_v8 }
  0x87   :  { %750 = vmatprep.mubr.msk.f32.mxu0 %vm55_vm0, %v41_v9  ;;  %807 = vmatprep.subr.mxu0 %v465_v25 }
  0x88   :  { %808 = vmatpush3.msra.mxu0 %v465_v25 }
  0x89   :  { %809 = vmatprep.subr.mxu0 %v464_v27 }
  0x8a   :  { %v42_v10 = vpop.trf.xlu0  ;;  %810 = vmatpush3.msra.mxu0 %v464_v27 }
  0x8b   :  { %751 = vmatmul.mubr.msk.f32.gmra.mxu0 %vm55_vm0, %v42_v10 }
  0x8e   :  { %v43_v11 = vpop.trf.xlu0 }
  0x8f   :  { %753 = vmatprep.mubr.msk.f32.mxu0 %vm55_vm0, %v43_v11 }
  0x92   :  { %v44_v12 = vpop.trf.xlu0 }
  0x93   :  { %754 = vmatmul.mubr.msk.f32.gmra.mxu0 %vm55_vm0, %v44_v12 }
  0x96   :  { %v45_v13 = vpop.trf.xlu0 }
  0x97   :  { %756 = vmatprep.mubr.msk.f32.mxu0 %vm55_vm0, %v45_v13 }
  0x9a   :  { %v46_v14 = vpop.trf.xlu0 }
  0x9b   :  { %757 = vmatmul.mubr.msk.f32.gmra.mxu0 %vm55_vm0, %v46_v14 }
  0x9e   :  { %v47_v15 = vpop.trf.xlu0 }
  0x9f   :  { %759 = vmatprep.mubr.msk.f32.mxu1 %vm55_vm0, %v47_v15 }
  0xa2   :  { %v48_v16 = vpop.trf.xlu0 }
  0xa3   :  { %760 = vmatmul.mubr.msk.f32.vlgmr.msra.gmra.mxu1 %vm55_vm0, %v48_v16 }
  0xa4   :  { %772 = vmatpush3.msra.mxu1 %v252_v4 }
  0xa5   :  { %773 = vmatprep.subr.mxu1 %v251_v17 }
  0xa6   :  { %v49_v18 = vpop.trf.xlu0  ;;  %774 = vmatpush3.msra.mxu1 %v251_v17 }
  0xa7   :  { %762 = vmatprep.mubr.msk.f32.mxu1 %vm55_vm0, %v49_v18  ;;  %775 = vmatprep.subr.mxu1 %v250_v24 }
  0xa8   :  { %776 = vmatpush3.msra.mxu1 %v250_v24 }
  0xa9   :  { %777 = vmatprep.subr.mxu1 %v249_v26 }
  0xaa   :  { %v50_v19 = vpop.trf.xlu0  ;;  %778 = vmatpush3.msra.mxu1 %v249_v26 }
  0xab   :  { %763 = vmatmul.mubr.msk.f32.gmra.mxu1 %vm55_vm0, %v50_v19 }
  0xae   :  { %v51_v20 = vpop.trf.xlu0 }
  0xaf   :  { %765 = vmatprep.mubr.msk.f32.mxu1 %vm55_vm0, %v51_v20 }
  0xb2   :  { %v52_v21 = vpop.trf.xlu0 }
  0xb3   :  { %766 = vmatmul.mubr.msk.f32.gmra.mxu1 %vm55_vm0, %v52_v21 }
  0xb6   :  { %v53_v22 = vpop.trf.xlu0 }
  0xb7   :  { %768 = vmatprep.mubr.msk.f32.mxu1 %vm55_vm0, %v53_v22 }
  0xba   :  { %v54_v23 = vpop.trf.xlu0 }
  0xbb   :  { %769 = vmatmul.mubr.msk.f32.gmra.mxu1 %vm55_vm0, %v54_v23 }
 0x143   :  { %v749_v28 = vpop.f32.mrf.mxu0 }
 0x145   :  { %v170_v29 = vpop.f32.mrf.mxu0 }
 0x146   :  { %779 = vmatprep.mubr.msk.f32.mxu1 %vm253_vm1, %v170_v29  ;;  %811 = vmatprep.mubr.msk.f32.mxu0 %vm253_vm1, %v170_v29 }
 0x147   :  { %780 = vmatmul.mubr.msk.f32.vlgmr.msra.gmra.mxu1 %vm253_vm1, %v749_v28  ;;  %812 = vmatmul.mubr.msk.f32.vlgmr.msra.gmra.mxu0 %vm253_vm1, %v749_v28 }
 0x14b   :  { %v752_v30 = vpop.f32.mrf.mxu0 }
 0x14d   :  { %v180_v31 = vpop.f32.mrf.mxu0 }
 0x14e   :  { %782 = vmatprep.mubr.msk.f32.mxu1 %vm253_vm1, %v180_v31  ;;  %814 = vmatprep.mubr.msk.f32.mxu0 %vm253_vm1, %v180_v31 }
 0x14f   :  { %783 = vmatmul.mubr.msk.f32.gmra.mxu1 %vm253_vm1, %v752_v30  ;;  %815 = vmatmul.mubr.msk.f32.gmra.mxu0 %vm253_vm1, %v752_v30 }
 0x153   :  { %v755_v32 = vpop.f32.mrf.mxu0 }
 0x155   :  { %v190_v33 = vpop.f32.mrf.mxu0 }
 0x156   :  { %785 = vmatprep.mubr.msk.f32.mxu1 %vm253_vm1, %v190_v33  ;;  %817 = vmatprep.mubr.msk.f32.mxu0 %vm253_vm1, %v190_v33 }
 0x157   :  { %786 = vmatmul.mubr.msk.f32.gmra.mxu1 %vm253_vm1, %v755_v32  ;;  %818 = vmatmul.mubr.msk.f32.gmra.mxu0 %vm253_vm1, %v755_v32 }
 0x15b   :  { %v758_v34 = vpop.f32.mrf.mxu0 }
 0x15d   :  { %v200_v35 = vpop.f32.mrf.mxu0 }
 0x15e   :  { %788 = vmatprep.mubr.msk.f32.mxu1 %vm253_vm1, %v200_v35  ;;  %820 = vmatprep.mubr.msk.f32.mxu0 %vm253_vm1, %v200_v35 }
 0x15f   :  { %789 = vmatmul.mubr.msk.f32.gmra.mxu1 %vm253_vm1, %v758_v34  ;;  %821 = vmatmul.mubr.msk.f32.gmra.mxu0 %vm253_vm1, %v758_v34 }
 0x163   :  { %v761_v36 = vpop.f32.mrf.mxu1 }
 0x165   :  { %v210_v37 = vpop.f32.mrf.mxu1 }
 0x166   :  { %791 = vmatprep.mubr.msk.f32.mxu1 %vm253_vm1, %v210_v37  ;;  %823 = vmatprep.mubr.msk.f32.mxu0 %vm253_vm1, %v210_v37 }
 0x167   :  { %792 = vmatmul.mubr.msk.f32.gmra.mxu1 %vm253_vm1, %v761_v36  ;;  %824 = vmatmul.mubr.msk.f32.gmra.mxu0 %vm253_vm1, %v761_v36 }
 0x16b   :  { %v764_v38 = vpop.f32.mrf.mxu1 }
 0x16d   :  { %v220_v39 = vpop.f32.mrf.mxu1 }
 0x16e   :  { %794 = vmatprep.mubr.msk.f32.mxu1 %vm253_vm1, %v220_v39  ;;  %826 = vmatprep.mubr.msk.f32.mxu0 %vm253_vm1, %v220_v39 }
 0x16f   :  { %795 = vmatmul.mubr.msk.f32.gmra.mxu1 %vm253_vm1, %v764_v38  ;;  %827 = vmatmul.mubr.msk.f32.gmra.mxu0 %vm253_vm1, %v764_v38 }
 0x173   :  { %v767_v40 = vpop.f32.mrf.mxu1 }
 0x175   :  { %v230_v41 = vpop.f32.mrf.mxu1 }
 0x176   :  { %797 = vmatprep.mubr.msk.f32.mxu1 %vm253_vm1, %v230_v41  ;;  %829 = vmatprep.mubr.msk.f32.mxu0 %vm253_vm1, %v230_v41 }
 0x177   :  { %798 = vmatmul.mubr.msk.f32.gmra.mxu1 %vm253_vm1, %v767_v40  ;;  %830 = vmatmul.mubr.msk.f32.gmra.mxu0 %vm253_vm1, %v767_v40 }
 0x17b   :  { %v770_v42 = vpop.f32.mrf.mxu1 }
 0x17d   :  { %v240_v43 = vpop.f32.mrf.mxu1 }
 0x17e   :  { %800 = vmatprep.mubr.msk.f32.mxu1 %vm253_vm1, %v240_v43  ;;  %832 = vmatprep.mubr.msk.f32.mxu0 %vm253_vm1, %v240_v43 }
 0x17f   :  { %801 = vmatmul.mubr.msk.f32.gmra.mxu1 %vm253_vm1, %v770_v42  ;;  %833 = vmatmul.mubr.msk.f32.gmra.mxu0 %vm253_vm1, %v770_v42 }
 0x207   :  { %v781_v44 = vpop.f32.mrf.mxu1  ;;  %v813_v45 = vpop.f32.mrf.mxu0 }
 0x208   :  { %449 = vst.msk [vmem:[%s1086_s4 + $0x8] sm:$0xff] %vm447_vm2, %v781_v44  ;;  %614 = vst.msk [vmem:[%s1087_s5 + $0x8] sm:$0xff] %vm447_vm2, %v813_v45 }
 0x209   :  { %v368_v46 = vpop.f32.mrf.mxu1  ;;  %v534_v47 = vpop.f32.mrf.mxu0 }
 0x20a   :  { %448 = vst.msk [vmem:[%s1086_s4] sm:$0xff] %vm447_vm2, %v368_v46  ;;  %613 = vst.msk [vmem:[%s1087_s5] sm:$0xff] %vm447_vm2, %v534_v47 }
 0x20f   :  { %v784_v48 = vpop.f32.mrf.mxu1  ;;  %v816_v49 = vpop.f32.mrf.mxu0 }
 0x210   :  { %451 = vst.msk [vmem:[%s1086_s4 + $0x18] sm:$0xff] %vm447_vm2, %v784_v48  ;;  %616 = vst.msk [vmem:[%s1087_s5 + $0x18] sm:$0xff] %vm447_vm2, %v816_v49 }
 0x211   :  { %v378_v50 = vpop.f32.mrf.mxu1  ;;  %v544_v51 = vpop.f32.mrf.mxu0 }
 0x212   :  { %450 = vst.msk [vmem:[%s1086_s4 + $0x10] sm:$0xff] %vm447_vm2, %v378_v50  ;;  %615 = vst.msk [vmem:[%s1087_s5 + $0x10] sm:$0xff] %vm447_vm2, %v544_v51 }
 0x217   :  { %v787_v52 = vpop.f32.mrf.mxu1  ;;  %v819_v53 = vpop.f32.mrf.mxu0 }
 0x218   :  { %453 = vst.msk [vmem:[%s1086_s4 + $0x28] sm:$0xff] %vm447_vm2, %v787_v52  ;;  %618 = vst.msk [vmem:[%s1087_s5 + $0x28] sm:$0xff] %vm447_vm2, %v819_v53 }
 0x219   :  { %v388_v54 = vpop.f32.mrf.mxu1  ;;  %v554_v55 = vpop.f32.mrf.mxu0 }
 0x21a   :  { %452 = vst.msk [vmem:[%s1086_s4 + $0x20] sm:$0xff] %vm447_vm2, %v388_v54  ;;  %617 = vst.msk [vmem:[%s1087_s5 + $0x20] sm:$0xff] %vm447_vm2, %v554_v55 }
 0x21f   :  { %v790_v56 = vpop.f32.mrf.mxu1  ;;  %v822_v57 = vpop.f32.mrf.mxu0 }
 0x220   :  { %455 = vst.msk [vmem:[%s1086_s4 + $0x38] sm:$0xff] %vm447_vm2, %v790_v56  ;;  %620 = vst.msk [vmem:[%s1087_s5 + $0x38] sm:$0xff] %vm447_vm2, %v822_v57 }
 0x221   :  { %v398_v58 = vpop.f32.mrf.mxu1  ;;  %v564_v59 = vpop.f32.mrf.mxu0 }
 0x222   :  { %454 = vst.msk [vmem:[%s1086_s4 + $0x30] sm:$0xff] %vm447_vm2, %v398_v58  ;;  %619 = vst.msk [vmem:[%s1087_s5 + $0x30] sm:$0xff] %vm447_vm2, %v564_v59 }
 0x227   :  { %v793_v60 = vpop.f32.mrf.mxu1  ;;  %v825_v61 = vpop.f32.mrf.mxu0 }
 0x228   :  { %457 = vst.msk [vmem:[%s1086_s4 + $0x48] sm:$0xff] %vm447_vm2, %v793_v60  ;;  %622 = vst.msk [vmem:[%s1087_s5 + $0x48] sm:$0xff] %vm447_vm2, %v825_v61 }
 0x229   :  { %v408_v62 = vpop.f32.mrf.mxu1  ;;  %v574_v63 = vpop.f32.mrf.mxu0 }
 0x22a   :  { %456 = vst.msk [vmem:[%s1086_s4 + $0x40] sm:$0xff] %vm447_vm2, %v408_v62  ;;  %621 = vst.msk [vmem:[%s1087_s5 + $0x40] sm:$0xff] %vm447_vm2, %v574_v63 }
 0x22f   :  { %v796_v0 = vpop.f32.mrf.mxu1  ;;  %v828_v1 = vpop.f32.mrf.mxu0 }
 0x230   :  { %459 = vst.msk [vmem:[%s1086_s4 + $0x58] sm:$0xff] %vm447_vm2, %v796_v0  ;;  %624 = vst.msk [vmem:[%s1087_s5 + $0x58] sm:$0xff] %vm447_vm2, %v828_v1 }
 0x231   :  { %v418_v2 = vpop.f32.mrf.mxu1  ;;  %v584_v3 = vpop.f32.mrf.mxu0 }
 0x232   :  { %458 = vst.msk [vmem:[%s1086_s4 + $0x50] sm:$0xff] %vm447_vm2, %v418_v2  ;;  %623 = vst.msk [vmem:[%s1087_s5 + $0x50] sm:$0xff] %vm447_vm2, %v584_v3 }
 0x237   :  { %v799_v4 = vpop.f32.mrf.mxu1  ;;  %v831_v5 = vpop.f32.mrf.mxu0 }
 0x238   :  { %461 = vst.msk [vmem:[%s1086_s4 + $0x68] sm:$0xff] %vm447_vm2, %v799_v4  ;;  %626 = vst.msk [vmem:[%s1087_s5 + $0x68] sm:$0xff] %vm447_vm2, %v831_v5 }
 0x239   :  { %v428_v6 = vpop.f32.mrf.mxu1  ;;  %v594_v7 = vpop.f32.mrf.mxu0 }
 0x23a   :  { %460 = vst.msk [vmem:[%s1086_s4 + $0x60] sm:$0xff] %vm447_vm2, %v428_v6  ;;  %625 = vst.msk [vmem:[%s1087_s5 + $0x60] sm:$0xff] %vm447_vm2, %v594_v7 }
 0x23f   :  { %v802_v8 = vpop.f32.mrf.mxu1  ;;  %v834_v9 = vpop.f32.mrf.mxu0 }
 0x240   :  { %463 = vst.msk [vmem:[%s1086_s4 + $0x78] sm:$0xff] %vm447_vm2, %v802_v8  ;;  %628 = vst.msk [vmem:[%s1087_s5 + $0x78] sm:$0xff] %vm447_vm2, %v834_v9 }
 0x241   :  { %v438_v10 = vpop.f32.mrf.mxu1  ;;  %v604_v11 = vpop.f32.mrf.mxu0 }
 0x242   :  { %462 = vst.msk [vmem:[%s1086_s4 + $0x70] sm:$0xff] %vm447_vm2, %v438_v10  ;;  %627 = vst.msk [vmem:[%s1087_s5 + $0x70] sm:$0xff] %vm447_vm2, %v604_v11 }

</bundles_post_ra>
